<compile_context>
chip_gen: v7x
topology: tpu7x:2x2x1
jax: 0.10.0
libtpu: 0.0.40
codegen_flags: <defaults>
</compile_context>

<pallas_src>
import jax
import jax.numpy as jnp
from jax.experimental import pallas as pl
from jax.experimental.pallas import tpu as pltpu


def _fine_pose_kernel(x_ref, tv_ref, w1_ref, b1_ref, w2_ref, b2_ref, o_ref):
    """o = (relu(x @ w1 + b1) + tv) @ w2 + b2, f32 accumulation + epilogue."""
    # fc1 on the MXU; operands may be f32 or bf16, accumulation is f32.
    h = jnp.dot(x_ref[...], w1_ref[...], preferred_element_type=jnp.float32)
    # Bias + ReLU + teacher residual in f32 on the VPU (v5e has no bf16 VPU).
    h = jnp.maximum(h + b1_ref[...], 0.0) + tv_ref[...].astype(jnp.float32)
    # fc2: cast activations to the weights' matmul dtype, accumulate in f32.
    y = jnp.dot(h.astype(w2_ref.dtype), w2_ref[...],
                preferred_element_type=jnp.float32)
    o_ref[...] = (y + b2_ref[...]).astype(o_ref.dtype)


def prepare_fine_pose_params(w1, b1, w2, b2, *, use_bf16_matmul=False):
    """One-time parameter preparation (hoisted out of the per-call hot path).

    w1: (output_size, hidden_size)   b1: (hidden_size,)
    w2: (hidden_size, output_size)   b2: (output_size,)
    i.e. already the transposed (in, out) layout of torch Linear.weight.
    use_bf16_matmul: store weights in bf16 for the MXU (v6e / v7x); biases
    and the elementwise epilogue stay f32.
    """
    mm_dtype = jnp.bfloat16 if use_bf16_matmul else jnp.float32
    return {
        "w1": w1.astype(mm_dtype),
        "b1": b1.reshape(1, -1).astype(jnp.float32),
        "w2": w2.astype(mm_dtype),
        "b2": b2.reshape(1, -1).astype(jnp.float32),
        "mm_dtype": mm_dtype,
    }


def fine_pose_net(params, coarse_pose, teacher_vpc, *, batch_tile=256):
    """Forward pass.

    coarse_pose: (B, output_size)   teacher_vpc: (B, hidden_size)

    B <  batch_tile (or B not a multiple of it): one grid-less call, every
        operand VMEM-resident, no padding.
    B >= batch_tile and divisible: 1-D parallel grid over B; activations /
        output streamed per tile, weights resident across grid steps.
    """
    B, out_size = coarse_pose.shape
    hidden = params["w1"].shape[1]
    mm_dtype = params["mm_dtype"]

    # Cast streamed activations to the matmul dtype (halves DMA bytes in
    # bf16 mode); no-op for f32.
    x = coarse_pose.astype(mm_dtype)
    tv = teacher_vpc.astype(mm_dtype)

    # Advisory cost from the *logical* problem (no padding anywhere).
    flops = 2 * B * (out_size * hidden + hidden * out_size)
    bytes_accessed = (
        x.size * x.dtype.itemsize
        + tv.size * tv.dtype.itemsize
        + params["w1"].size * params["w1"].dtype.itemsize
        + params["w2"].size * params["w2"].dtype.itemsize
        + 4 * (params["b1"].size + params["b2"].size)
        + 4 * B * out_size
    )
    cost = pl.CostEstimate(flops=flops, transcendentals=0,
                           bytes_accessed=bytes_accessed)
    out_shape = jax.ShapeDtypeStruct((B, out_size), coarse_pose.dtype)
    args = (x, tv, params["w1"], params["b1"], params["w2"], params["b2"])

    if B < batch_tile or B % batch_tile != 0:
        # Small / ragged batch: single grid-less invocation. Full-array blocks
        # are exempt from the (8,128) rule and the masked 57-lane store is
        # free at this size; no pad/slice HLOs in the hot path.
        vmem = pl.BlockSpec(memory_space=pltpu.MemorySpace.VMEM)
        return pl.pallas_call(
            _fine_pose_kernel,
            out_shape=out_shape,
            in_specs=[vmem] * 6,
            out_specs=vmem,
            cost_estimate=cost,
        )(*args)

    # Batched path: stream (TB, .) activation tiles; weights get constant
    # index_maps so they are DMA'd once and stay VMEM-resident. The parallel
    # axis lets Mosaic shard the batch across both TensorCores on v7x.
    tb = batch_tile
    return pl.pallas_call(
        _fine_pose_kernel,
        out_shape=out_shape,
        grid=(B // tb,),
        in_specs=[
            pl.BlockSpec((tb, out_size), lambda i: (i, 0)),   # coarse_pose
            pl.BlockSpec((tb, hidden), lambda i: (i, 0)),     # teacher_vpc
            pl.BlockSpec((out_size, hidden), lambda i: (0, 0)),  # w1 (resident)
            pl.BlockSpec((1, hidden), lambda i: (0, 0)),         # b1 (resident)
            pl.BlockSpec((hidden, out_size), lambda i: (0, 0)),  # w2 (resident)
            pl.BlockSpec((1, out_size), lambda i: (0, 0)),       # b2 (resident)
        ],
        out_specs=pl.BlockSpec((tb, out_size), lambda i: (i, 0)),
        compiler_params=pltpu.CompilerParams(
            dimension_semantics=("parallel",)),
        cost_estimate=cost,
    )(*args)


def fine_pose_net_ref(coarse_pose, teacher_vpc, w1, b1, w2, b2):
    h = jnp.maximum(coarse_pose @ w1 + b1, 0.0) + teacher_vpc
    return h @ w2 + b2


if __name__ == "__main__":
    hidden_size = 128
    output_size = 57

    key = jax.random.PRNGKey(0)
    k_x, k_tv, k_w1, k_b1, k_w2, k_b2, k_xb, k_tvb = jax.random.split(key, 8)

    # PyTorch Linear weight is (out, in); we store the transposed (in, out).
    w1 = jax.random.normal(k_w1, (output_size, hidden_size), jnp.float32) * 0.1
    b1 = jax.random.normal(k_b1, (hidden_size,), jnp.float32) * 0.1
    w2 = jax.random.normal(k_w2, (hidden_size, output_size), jnp.float32) * 0.1
    b2 = jax.random.normal(k_b2, (output_size,), jnp.float32) * 0.1

    params_f32 = prepare_fine_pose_params(w1, b1, w2, b2)

    # --- small-batch (per-frame) path -----------------------------------
    batch = 8
    x_s = jax.random.normal(k_x, (batch, output_size), jnp.float32)
    tv_s = jax.random.normal(k_tv, (batch, hidden_size), jnp.float32)

    out_s = jax.block_until_ready(fine_pose_net(params_f32, x_s, tv_s))
    ref_s = fine_pose_net_ref(x_s, tv_s, w1, b1, w2, b2)
    assert out_s.shape == (batch, output_size)
    assert jnp.allclose(out_s, ref_s, atol=1e-4, rtol=1e-4)

    # --- batched path: frames stacked along B, parallel grid ------------
    big_batch, tb = 256, 128
    x_b = jax.random.normal(k_xb, (big_batch, output_size), jnp.float32)
    tv_b = jax.random.normal(k_tvb, (big_batch, hidden_size), jnp.float32)

    out_b = jax.block_until_ready(
        fine_pose_net(params_f32, x_b, tv_b, batch_tile=tb))
    ref_b = fine_pose_net_ref(x_b, tv_b, w1, b1, w2, b2)
    assert out_b.shape == (big_batch, output_size)
    assert jnp.allclose(out_b, ref_b, atol=1e-4, rtol=1e-4)

    # --- batched bf16-matmul path (v6e/v7x recommendation) --------------
    params_bf16 = prepare_fine_pose_params(w1, b1, w2, b2, use_bf16_matmul=True)
    out_bf16 = jax.block_until_ready(
        fine_pose_net(params_bf16, x_b, tv_b, batch_tile=tb))
    assert out_bf16.shape == (big_batch, output_size)
    assert jnp.allclose(out_bf16, ref_b, atol=2e-1, rtol=1e-1)

    print("KERNEL_OK")
</pallas_src>

<mosaic_0001>
module attributes {stable_mosaic.version = 11 : i64} {
  func.func @_fine_pose_kernel(%arg0: memref<8x57xf32, #tpu.memory_space<vmem>>, %arg1: memref<8x128xf32, #tpu.memory_space<vmem>>, %arg2: memref<57x128xf32, #tpu.memory_space<vmem>>, %arg3: memref<1x128xf32, #tpu.memory_space<vmem>>, %arg4: memref<128x57xf32, #tpu.memory_space<vmem>>, %arg5: memref<1x57xf32, #tpu.memory_space<vmem>>, %arg6: memref<8x57xf32, #tpu.memory_space<vmem>>) attributes {dimension_semantics = [], scalar_prefetch = 0 : i64, scratch_operands = 0 : i64, tpu.core_type = #tpu.core_type<tc>} {
    %c0 = arith.constant 0 : index
    %c0_0 = arith.constant 0 : index
    %0 = vector.load %arg0[%c0, %c0_0] : memref<8x57xf32, #tpu.memory_space<vmem>>, vector<8x57xf32>
    %c0_1 = arith.constant 0 : index
    %c0_2 = arith.constant 0 : index
    %1 = vector.load %arg2[%c0_1, %c0_2] : memref<57x128xf32, #tpu.memory_space<vmem>>, vector<57x128xf32>
    %cst = arith.constant dense<0.000000e+00> : vector<8x128xf32>
    %2 = tpu.matmul %0, %1, %cst {dimension_numbers = #tpu.dot_dimension_numbers<[1], [0], [0], [1], [0, 0, 1, 1], [], []>} : vector<8x57xf32>, vector<57x128xf32>, vector<8x128xf32> -> vector<8x128xf32>
    %c0_3 = arith.constant 0 : index
    %c0_4 = arith.constant 0 : index
    %3 = vector.load %arg3[%c0_3, %c0_4] : memref<1x128xf32, #tpu.memory_space<vmem>>, vector<1x128xf32>
    %4 = vector.broadcast %3 : vector<1x128xf32> to vector<8x128xf32>
    %5 = arith.addf %2, %4 : vector<8x128xf32>
    %cst_5 = arith.constant 0.000000e+00 : f32
    %6 = vector.broadcast %cst_5 : f32 to vector<8x128xf32>
    %7 = arith.maximumf %5, %6 : vector<8x128xf32>
    %c0_6 = arith.constant 0 : index
    %c0_7 = arith.constant 0 : index
    %8 = vector.load %arg1[%c0_6, %c0_7] : memref<8x128xf32, #tpu.memory_space<vmem>>, vector<8x128xf32>
    %9 = arith.addf %7, %8 : vector<8x128xf32>
    %c0_8 = arith.constant 0 : index
    %c0_9 = arith.constant 0 : index
    %10 = vector.load %arg4[%c0_8, %c0_9] : memref<128x57xf32, #tpu.memory_space<vmem>>, vector<128x57xf32>
    %cst_10 = arith.constant dense<0.000000e+00> : vector<8x57xf32>
    %11 = tpu.matmul %9, %10, %cst_10 {dimension_numbers = #tpu.dot_dimension_numbers<[1], [0], [0], [1], [0, 0, 1, 1], [], []>} : vector<8x128xf32>, vector<128x57xf32>, vector<8x57xf32> -> vector<8x57xf32>
    %c0_11 = arith.constant 0 : index
    %c0_12 = arith.constant 0 : index
    %12 = vector.load %arg5[%c0_11, %c0_12] : memref<1x57xf32, #tpu.memory_space<vmem>>, vector<1x57xf32>
    %13 = vector.broadcast %12 : vector<1x57xf32> to vector<8x57xf32>
    %14 = arith.addf %11, %13 : vector<8x57xf32>
    %c0_13 = arith.constant 0 : index
    %c0_14 = arith.constant 0 : index
    %15 = vector.load %arg6[%c0_13, %c0_14] : memref<8x57xf32, #tpu.memory_space<vmem>>, vector<8x57xf32>
    tpu.vector_store %arg6[%c0_13, %c0_14], %14 {strides = array<i32>} : memref<8x57xf32, #tpu.memory_space<vmem>>, vector<8x57xf32>,
    return
  }
}

</mosaic_0001>

<bundles_post_ra>
// kernel: tpu_custom_call.1
= control target key start
LH: loop header
LB: loop body
LE: loop exit
PB: predicated region body
PF: predicated region fallthrough
CT: control target
= control target key end

     0   :  { %v379_v3 = vmov 0.0|0.0   ;;  %vm380_vm0 = vmmov 0   ;;  %v381_v6 = vmov 0.0   ;;  %s529_s0 = inlined_call_operand.vmem [shape: f32[8,57], index: 0, kind: input, shape index: {}]   ;;  %s530_s1 = inlined_call_operand.vmem [shape: f32[8,128], index: 1, kind: input, shape index: {}]   ;;  %s531_s2 = inlined_call_operand.vmem [shape: f32[57,128], index: 2, kind: input, shape index: {}]   ;;  %s532_s3 = inlined_call_operand.vmem [shape: f32[1,128], index: 3, kind: input, shape index: {}]   ;;  %s533_s4 = inlined_call_operand.vmem [shape: f32[128,57], index: 4, kind: input, shape index: {}]   ;;  %s534_s5 = inlined_call_operand.vmem [shape: f32[1,57], index: 5, kind: input, shape index: {}]   ;;  %s535_s6 = inlined_call_operand.hbm [shape: f32[8,57], index: 6, kind: output, shape index: {}]  }
   0x1   :  { %v25_v0 = vld [vmem:[%s531_s2] sm:$0xff]  ;;  %v26_v1 = vld [vmem:[%s531_s2 + $0x8] sm:$0xff]  ;;  %v27_v2 = vld [vmem:[%s531_s2 + $0x10] sm:$0xff]  ;;  %313 = vmatprep.subr.bf16.mxu0 %v379_v3  ;;  %326 = vmatprep.subr.bf16.mxu1 %v379_v3 }
   0x2   :  { %v314_v4 = vpack.c.bf16 %v26_v1, %v25_v0  ;;  %v28_v5 = vld [vmem:[%s531_s2 + $0x18] sm:$0xff]  ;;  %275 = vmatprep.mubr.msk.f32.mxu0 %vm380_vm0, %v381_v6  ;;  %310 = vmatprep.mubr.msk.f32.mxu1 %vm380_vm0, %v381_v6  ;;  %v29_v8 = vld [vmem:[%s531_s2 + $0x20] sm:$0xff]  ;;  %v122_v10 = vld [vmem:[%s533_s4 + $0x8] sm:$0xff] }
   0x3   :  { %v317_v7 = vpack.c.bf16 %v28_v5, %v27_v2  ;;  %v121_v9 = vld [vmem:[%s533_s4] sm:$0xff]  ;;  %v30_v11 = vld [vmem:[%s531_s2 + $0x28] sm:$0xff]  ;;  %v123_v13 = vld [vmem:[%s533_s4 + $0x10] sm:$0xff] }
   0x4   :  { %315 = vmatpush3.bf16.msra.mxu0 %v314_v4  ;;  %v327_v12 = vpack.c.bf16 %v122_v10, %v121_v9  ;;  %v124_v14 = vld [vmem:[%s533_s4 + $0x18] sm:$0xff]  ;;  %v320_v16 = vpack.c.bf16 %v30_v11, %v29_v8  ;;  %v125_v17 = vld [vmem:[%s533_s4 + $0x20] sm:$0xff]  ;;  %v126_v18 = vld [vmem:[%s533_s4 + $0x28] sm:$0xff] }
   0x5   :  { %316 = vmatprep.subr.bf16.mxu0 %v379_v3  ;;  %v330_v15 = vpack.c.bf16 %v124_v14, %v123_v13 }
   0x6   :  { %328 = vmatpush3.bf16.msra.mxu1 %v327_v12 }
   0x7   :  { %329 = vmatprep.subr.bf16.mxu1 %v379_v3 }
   0x8   :  { %318 = vmatpush3.bf16.msra.mxu0 %v317_v7 }
   0x9   :  { %11 = vsyncpa [#allocation3], 0  ;;  %319 = vmatprep.subr.bf16.mxu0 %v379_v3  ;;  %v31_v19 = vld [vmem:[%s531_s2 + $0x30] sm:$0xff]  ;;  %v32_v20 = vld [vmem:[%s531_s2 + $0x38] sm:$0x1]  ;;  %vm44_vm1 = vcmask 1040384   ;;  %v333_v21 = vpack.c.bf16 %v126_v18, %v125_v17 }
   0xa   :  { %331 = vmatpush3.bf16.msra.mxu1 %v330_v15  ;;  %v323_v22 = vpack.c.bf16 %v32_v20, %v31_v19  ;;  %v127_v23 = vld [vmem:[%s533_s4 + $0x30] sm:$0xff]  ;;  %v128_v24 = vld [vmem:[%s533_s4 + $0x38] sm:$0xff]  ;;  %vm382_vm2 = vmmov 1   ;;  %v24_v26 = vld [vmem:[%s529_s0] sm:$0xff]  ;;  %vm40_vm4 = vcmask 465920  }
   0xb   :  { %332 = vmatprep.subr.bf16.mxu1 %v379_v3  ;;  %vm324_vm3 = vmpackc.low %vm44_vm1, %vm382_vm2  ;;  %v336_v25 = vpack.c.bf16 %v128_v24, %v127_v23  ;;  %v129_v27 = vld [vmem:[%s533_s4 + $0x40] sm:$0xff]  ;;  %v130_v28 = vld [vmem:[%s533_s4 + $0x48] sm:$0xff] }
   0xc   :  { %321 = vmatpush3.bf16.msra.mxu0 %v320_v16  ;;  %v339_v29 = vpack.c.bf16 %v130_v28, %v129_v27  ;;  %v131_v30 = vld [vmem:[%s533_s4 + $0x50] sm:$0xff]  ;;  %v132_v31 = vld [vmem:[%s533_s4 + $0x58] sm:$0xff]  ;;  %v133_v33 = vld [vmem:[%s533_s4 + $0x60] sm:$0xff] }
   0xd   :  { %322 = vmatprep.subr.bf16.mxu0 %v379_v3  ;;  %v342_v32 = vpack.c.bf16 %v132_v31, %v131_v30  ;;  %v134_v34 = vld [vmem:[%s533_s4 + $0x68] sm:$0xff]  ;;  %v135_v36 = vld [vmem:[%s533_s4 + $0x70] sm:$0xff]  ;;  %v136_v37 = vld [vmem:[%s533_s4 + $0x78] sm:$0xff]  ;;  %s383_s4 = smov [#allocation2]  }
   0xe   :  { %334 = vmatpush3.bf16.msra.mxu1 %v333_v21  ;;  %v345_v35 = vpack.c.bf16 %v134_v34, %v133_v33  ;;  %v348_v38 = vpack.c.bf16 %v136_v37, %v135_v36  ;;  %v229_v39 = vld [vmem:[%s532_s3] ss:$0 sm:$0xff]  ;;  %s221_s27 = sshll.u32 %s383_s4, 4  ;;  %s222_s27 = int_to_ptr.vmem [resolvable:$true] %s221_s27 }
   0xf   :  { %335 = vmatprep.subr.bf16.mxu1 %v379_v3  ;;  %v119_v43 = vld [vmem:[%s530_s1] sm:$0xff]  ;;  %s355_s3 = scalar_lea.vmem %s222_s27, 128  ;;  %p360_p1 = scmp.lt.s32.totalorder %s222_s27, %s222_s27 }
  0x10   :  { %325 = vmatpush3.bf16.msk.msra.mxu0 %vm324_vm3, %v323_v22  ;;  %v232_v46 = vld [vmem:[%s534_s5] ss:$0 sm:$0xff]  ;;  %p356_p0 = scmp.ne.s32.totalorder %s222_s27, %s355_s3  ;;  %p361_p2 = scmp.lt.s32.totalorder %s355_s3, %s355_s3 }
  0x12   :  { %337 = vmatpush3.bf16.msra.mxu1 %v336_v25  ;;  %p362_p3 = por %p361_p2, %p360_p1 }
  0x13   :  { %276 = vmatmul.mubr.msk.f32.vlgmr.msra.gmra.mrb[0].mxu0 %vm40_vm4, %v24_v26  ;;  %338 = vmatprep.subr.bf16.mxu1 %v379_v3 }
  0x14   :  { %p363_p4 = pnand %p362_p3, %p356_p0 }
  0x16   :  { %340 = vmatpush3.bf16.msra.mxu1 %v339_v29 }
  0x17   :  { %341 = vmatprep.subr.bf16.mxu1 %v379_v3 }
  0x1a   :  { %343 = vmatpush3.bf16.msra.mxu1 %v342_v32 }
  0x1b   :  { %344 = vmatprep.subr.bf16.mxu1 %v379_v3 }
  0x1e   :  { %346 = vmatpush3.bf16.msra.mxu1 %v345_v35 }
  0x1f   :  { %347 = vmatprep.subr.bf16.mxu1 %v379_v3 }
  0x22   :  { %349 = vmatpush3.bf16.msra.mxu1 %v348_v38 }
  0xe6   :  { %v114_v40 = vpop.f32.mrb[0].mxu0 }
  0xe7   :  { %v115_v41 = vadd.f32 %v229_v39, %v114_v40  ;;  %v277_v42 = vpop.f32.mrb[1].mxu0 }
  0xe9   :  { %v118_v44 = vmax.f32 %v115_v41, 0.0 }
  0xeb   :  { %v120_v45 = vadd.f32 %v119_v43, %v118_v44 }
  0xed   :  { %311 = vmatmul.mubr.f32.vlgmr.msra.gmra.mrb[0].mxu1 %v120_v45 }
 0x1c0   :  { %v210_v47 = vpop.f32.mrb[0].mxu1 }
 0x1c1   :  { %v211_v48 = vadd.f32 %v232_v46, %v210_v47  ;;  %v312_v49 = vpop.f32.mrb[1].mxu1 }
 0x1c3   :  { %214 = vst.msk [vmem:[#allocation2] sm:$0xff] %vm40_vm4, %v211_v48 }
 0x1c4   :  { %366 = shalt.err (!%p363_p4)
}
 0x1c5   :  { %s367_s2 = scalar_lea.hbm %s535_s6, 128 }
 0x1c6   :  { %p368_p5 = scmp.ne.s32.totalorder %s535_s6, %s367_s2  ;;  %p371_p6 = scmp.lt.u32.totalorder %s367_s2, %s535_s6 }
 0x1c8   :  { %p373_p7 = pnand %p371_p6, %p368_p5 }
 0x1ca   :  { %376 = shalt.err (!%p373_p7)
}
 0x1cb   :  { %224 = dma.vmem_to_hbm [thread:$0]  %s222_s27, 128, %s535_s6, [#allocation3]  }
 0x1cc   :  { %377 = dma.done.wait [#allocation3], 128  }
 0x1cd   :  { %378 = vsyncadd [#allocation3], 4294967168 }
 0x1ce   :  { %228 = vsyncpa [#allocation3], 1 }

</bundles_post_ra>
